<compile_context>
chip_gen: v7x
topology: tpu7x:2x2x1
jax: 0.10.0
libtpu: 0.0.40
codegen_flags: <defaults>
</compile_context>

<pallas_src>
import numpy as np
import jax
import jax.numpy as jnp
from jax.experimental import pallas as pl
from jax.experimental.pallas import tpu as pltpu

# ----------------------------- sizes (small, synthetic) ----------------------
NUM_IMAGES = 2
OBJS_PER_IMG = 4
RELS_PER_IMG = 8
OBJ_DIM = 64          # in_channels
EMBED_DIM = 32
HIDDEN_DIM = 32
POOLING_DIM = 128     # != OBJ_DIM -> rel_feat_dim_not_match = True
NUM_OBJ_CLASSES = 16
GEO_DIM = 128         # geometry_feat_dim
PAIR_GEO_DIM = 32     # get_box_pair_info output width
BOX9_PAD = 128        # lane-pad the 9-d box encoding once up front

FUSED_PAD = 128                       # lane-dense (padded) width of the fused head||tail output
COMB_DIM = POOLING_DIM + FUSED_PAD    # combined aug_finalize + updim output width (256)

_MM_DTYPE = jnp.bfloat16   # MXU operand dtype; accumulation is always f32


def _round_up(x, m):
    return ((x + m - 1) // m) * m


def _row_tiling(m):
    """Row tile: exact-ish single tile when tiny, >=2 tiles (v7x megacore) for
    mid sizes, 256-row tiles when large. Grids use pl.cdiv (ragged last block
    allowed), so no explicit row padding is needed."""
    m = max(int(m), 1)
    if m <= 32:
        return _round_up(m, 8)
    if m <= 512:
        return _round_up((m + 1) // 2, 16)
    return 256


# ----------------------------- Pallas kernels --------------------------------
def _obj_fused_kernel(roi_ref, logits_ref, box9_ref, lab_ref,
                      wdist_ref,
                      pw1_ref, pb1_ref, pw2_ref, pb2_ref,
                      hwr_ref, hwe_ref, hwp_ref, hb_ref,
                      cwl_ref, cwr_ref, cwh_ref, cb_ref,
                      fused_ref, aug_ref):
    f32 = jnp.float32
    mm = _MM_DTYPE
    roi = roi_ref[...].astype(mm)          # [TM, OBJ_DIM]
    lab = lab_ref[...].astype(mm)          # [TM, EMBED_DIM]

    # --- word embedding from predicted class distribution: softmax(logits) @ W
    logits = logits_ref[...]
    mx = jnp.max(logits, axis=-1, keepdims=True)
    ex = jnp.exp(logits - mx)
    inv = pl.reciprocal(jnp.sum(ex, axis=-1, keepdims=True), approx=True)
    prob = (ex * inv).astype(mm)
    emb_dist = jnp.dot(prob, wdist_ref[...],
                       preferred_element_type=f32)             # [TM, EMBED]

    # --- pos_embed: FC(9->32, BN folded) -> FC(32->128) -> ReLU
    h = jnp.dot(box9_ref[...].astype(mm), pw1_ref[...],
                preferred_element_type=f32) + pb1_ref[...]
    pos = jnp.maximum(jnp.dot(h.astype(mm), pw2_ref[...],
                              preferred_element_type=f32) + pb2_ref[...], 0.0)

    # --- obj_hidden_linear on concat(roi, emb_dist, pos): split contraction
    #     against pre-split per-segment weights.
    aug_hidden = (
        jnp.dot(roi, hwr_ref[...], preferred_element_type=f32)
        + jnp.dot(emb_dist.astype(mm), hwe_ref[...], preferred_element_type=f32)
        + jnp.dot(pos.astype(mm), hwp_ref[...], preferred_element_type=f32)
        + hb_ref[...])                                          # [TM, HIDDEN]
    ah = aug_hidden.astype(mm)

    # --- fused updim_fc + aug_finalize_fc (shared LHS = lab|roi|aug_hidden):
    #     one 256-wide combined matmul, split in the epilogue.
    comb = (jnp.dot(lab, cwl_ref[...], preferred_element_type=f32)
            + jnp.dot(roi, cwr_ref[...], preferred_element_type=f32)
            + jnp.dot(ah, cwh_ref[...], preferred_element_type=f32)
            + cb_ref[...])                                      # [TM, 256]
    aug_ref[...] = jnp.maximum(comb[:, :POOLING_DIM], 0.0).astype(aug_ref.dtype)
    fused_ref[...] = comb[:, POOLING_DIM:].astype(fused_ref.dtype)


def _rel_fused_kernel(pair_ref, geo_ref, uni_ref,
                      s1w_ref, s1b_ref, s2w_ref, s2b_ref,
                      finw_ref, finb_ref, upw_ref, upb_ref,
                      out_ref):
    f32 = jnp.float32
    mm = _MM_DTYPE
    # spt_emb MLP: FC(32->H)+ReLU -> FC(H->2H)+ReLU
    s1 = jnp.maximum(jnp.dot(geo_ref[...].astype(mm), s1w_ref[...],
                             preferred_element_type=f32) + s1b_ref[...], 0.0)
    s2 = jnp.maximum(jnp.dot(s1.astype(mm), s2w_ref[...],
                             preferred_element_type=f32) + s2b_ref[...], 0.0)
    # spatial gating + finalize FC (+ReLU)
    gated = pair_ref[...].astype(f32) * s2
    rel = jnp.maximum(jnp.dot(gated.astype(mm), finw_ref[...],
                              preferred_element_type=f32) + finb_ref[...], 0.0)
    # fusion: up-dim union features + residual add
    rel = rel + jnp.dot(uni_ref[...].astype(mm), upw_ref[...],
                        preferred_element_type=f32) + upb_ref[...]
    out_ref[...] = rel.astype(out_ref.dtype)


# ----------------------------- Pallas wrappers --------------------------------
_CP = pltpu.CompilerParams(dimension_semantics=("parallel",))
_ROW = lambda i: (i, 0)
_REP = lambda i: (0, 0)


def _full_spec(arr):
    return pl.BlockSpec(arr.shape, _REP)


_OBJ_W_KEYS = ("w_dist", "pos_w1", "pos_b1", "pos_w2", "pos_b2",
               "hidw_roi", "hidw_emb", "hidw_pos", "hid_b",
               "cw_lab", "cw_roi", "cw_hid", "comb_b")
_REL_W_KEYS = ("spt1_w", "spt1_b", "spt2_w", "spt2_b",
               "fin_w", "fin_b", "up_w", "up_b")


def obj_fused_forward(pk, roi, logits, box9p, lab_emb):
    m = roi.shape[0]
    tm = _row_tiling(m)
    weights = [pk[k] for k in _OBJ_W_KEYS]
    fused, aug = pl.pallas_call(
        _obj_fused_kernel,
        out_shape=(jax.ShapeDtypeStruct((m, FUSED_PAD), _MM_DTYPE),
                   jax.ShapeDtypeStruct((m, POOLING_DIM), jnp.float32)),
        grid=(pl.cdiv(m, tm),),
        in_specs=[pl.BlockSpec((tm, OBJ_DIM), _ROW),
                  pl.BlockSpec((tm, NUM_OBJ_CLASSES), _ROW),
                  pl.BlockSpec((tm, BOX9_PAD), _ROW),
                  pl.BlockSpec((tm, EMBED_DIM), _ROW)]
                 + [_full_spec(w) for w in weights],
        out_specs=(pl.BlockSpec((tm, FUSED_PAD), _ROW),
                   pl.BlockSpec((tm, POOLING_DIM), _ROW)),
        compiler_params=_CP,
    )(roi, logits, box9p, lab_emb, *weights)
    return fused, aug


def rel_fused_forward(pk, pair_feats, pair_geo, union_features):
    m = pair_feats.shape[0]
    tm = _row_tiling(m)
    weights = [pk[k] for k in _REL_W_KEYS]
    out = pl.pallas_call(
        _rel_fused_kernel,
        out_shape=jax.ShapeDtypeStruct((m, POOLING_DIM), jnp.float32),
        grid=(pl.cdiv(m, tm),),
        in_specs=[pl.BlockSpec((tm, 2 * HIDDEN_DIM), _ROW),
                  pl.BlockSpec((tm, PAIR_GEO_DIM), _ROW),
                  pl.BlockSpec((tm, OBJ_DIM), _ROW)]
                 + [_full_spec(w) for w in weights],
        out_specs=pl.BlockSpec((tm, POOLING_DIM), _ROW),
        compiler_params=_CP,
    )(pair_feats, pair_geo, union_features, *weights)
    return out


# ----------------------------- box geometry glue ------------------------------
def encode_box_info(boxes, size):
    wid, hei = float(size[0]), float(size[1])
    wh = boxes[:, 2:] - boxes[:, :2] + 1.0
    xy = boxes[:, :2] + 0.5 * wh
    w, h = wh[:, 0:1], wh[:, 1:2]
    x, y = xy[:, 0:1], xy[:, 1:2]
    x1, y1, x2, y2 = boxes[:, 0:1], boxes[:, 1:2], boxes[:, 2:3], boxes[:, 3:4]
    return jnp.concatenate(
        [w / wid, h / hei, x / wid, y / hei, x1 / wid, y1 / hei, x2 / wid,
         y2 / hei, (w * h) / (wid * hei)], axis=1)


def get_box_info(boxes, need_norm, size=None):
    wh = boxes[:, 2:4] - boxes[:, 0:2] + 1.0
    center_box = jnp.concatenate([boxes[:, :2] + 0.5 * wh, wh], axis=1)
    box_info = jnp.concatenate([boxes, center_box], axis=1)
    if need_norm:
        box_info = box_info / float(max(max(size[0], size[1]), 100))
    return box_info


def get_box_pair_info(box1, box2):
    ub = jnp.stack([jnp.minimum(box1[:, 0], box2[:, 0]),
                    jnp.minimum(box1[:, 1], box2[:, 1]),
                    jnp.maximum(box1[:, 2], box2[:, 2]),
                    jnp.maximum(box1[:, 3], box2[:, 3])], axis=1)
    union_info = get_box_info(ub, need_norm=False)
    ib = jnp.stack([jnp.maximum(box1[:, 0], box2[:, 0]),
                    jnp.maximum(box1[:, 1], box2[:, 1]),
                    jnp.minimum(box1[:, 2], box2[:, 2]),
                    jnp.minimum(box1[:, 3], box2[:, 3])], axis=1)
    inter_info = get_box_info(ib, need_norm=False)
    invalid = (ib[:, 2] < ib[:, 0]) | (ib[:, 3] < ib[:, 1])
    inter_info = jnp.where(invalid[:, None], 0.0, inter_info)
    return jnp.concatenate([box1, box2, union_info, inter_info], axis=1)


# ----------------------------- parameters -------------------------------------
def init_params(key):
    def fc(key, fan_in, fan_out):
        kw, kb = jax.random.split(key)
        w = jax.random.normal(kw, (fan_in, fan_out), jnp.float32) / np.sqrt(fan_in)
        b = 0.01 * jax.random.normal(kb, (fan_out,), jnp.float32)
        return w, b

    keys = jax.random.split(key, 16)
    p = {}
    p["w_embed_dist"] = 0.1 * jax.random.normal(keys[0], (NUM_OBJ_CLASSES, EMBED_DIM), jnp.float32)
    p["w_embed_label"] = 0.1 * jax.random.normal(keys[1], (NUM_OBJ_CLASSES, EMBED_DIM), jnp.float32)
    p["pos_fc1_w"], p["pos_fc1_b"] = fc(keys[2], 9, 32)
    p["bn_gamma"] = 1.0 + 0.1 * jax.random.normal(keys[3], (32,), jnp.float32)
    p["bn_beta"] = 0.05 * jax.random.normal(keys[4], (32,), jnp.float32)
    p["bn_mean"] = 0.05 * jax.random.normal(keys[5], (32,), jnp.float32)
    p["bn_var"] = 0.5 + jnp.abs(jax.random.normal(keys[6], (32,), jnp.float32))
    p["pos_fc2_w"], p["pos_fc2_b"] = fc(keys[7], 32, GEO_DIM)
    p["hidden_w"], p["hidden_b"] = fc(keys[8], OBJ_DIM + EMBED_DIM + GEO_DIM, HIDDEN_DIM)
    p["updim_w"], p["updim_b"] = fc(keys[9], HIDDEN_DIM + OBJ_DIM + EMBED_DIM, 2 * HIDDEN_DIM)
    p["spt1_w"], p["spt1_b"] = fc(keys[10], 32, HIDDEN_DIM)
    p["spt2_w"], p["spt2_b"] = fc(keys[11], HIDDEN_DIM, 2 * HIDDEN_DIM)
    p["fin_w"], p["fin_b"] = fc(keys[12], 2 * HIDDEN_DIM, POOLING_DIM)
    p["union_up_w"], p["union_up_b"] = fc(keys[13], OBJ_DIM, POOLING_DIM)
    p["aug_fin_w"], p["aug_fin_b"] = fc(keys[14], HIDDEN_DIM + OBJ_DIM + EMBED_DIM, POOLING_DIM)
    return p


def pack_params(p):
    """Fold BN into pos_fc1, lane-pad its weight to 128 rows, pre-split the
    concat-segment weights, column-fuse updim_fc + aug_finalize_fc into one
    256-wide weight, cast matmul weights to bf16."""
    s = p["bn_gamma"] / jnp.sqrt(p["bn_var"] + 1e-5)
    w1 = p["pos_fc1_w"] * s[None, :]
    b1 = (p["pos_fc1_b"] - p["bn_mean"]) * s + p["bn_beta"]
    w1p = jnp.pad(w1, ((0, BOX9_PAD - w1.shape[0]), (0, 0)))

    # Combined weight columns: [0:128)=aug_finalize, [128:192)=updim(head||tail),
    # [192:256)=zeros (keeps the fused output 128-lane dense / unmasked stores).
    zcols = COMB_DIM - POOLING_DIM - 2 * HIDDEN_DIM
    def comb_rows(lo, hi):
        k = hi - lo
        return jnp.concatenate(
            [p["aug_fin_w"][lo:hi], p["updim_w"][lo:hi],
             jnp.zeros((k, zcols), jnp.float32)], axis=1)
    comb_b = jnp.concatenate(
        [p["aug_fin_b"], p["updim_b"], jnp.zeros((zcols,), jnp.float32)])

    def w(x):
        return x.astype(_MM_DTYPE)

    def b(x):
        return x.reshape(1, -1).astype(jnp.float32)

    hw = p["hidden_w"]   # rows ordered [roi(64), emb_dist(32), pos(128)]
    return {
        "w_dist": w(p["w_embed_dist"]),
        "w_label": p["w_embed_label"],                 # f32, gathered in JAX glue
        "pos_w1": w(w1p), "pos_b1": b(b1),
        "pos_w2": w(p["pos_fc2_w"]), "pos_b2": b(p["pos_fc2_b"]),
        "hidw_roi": w(hw[:OBJ_DIM]),
        "hidw_emb": w(hw[OBJ_DIM:OBJ_DIM + EMBED_DIM]),
        "hidw_pos": w(hw[OBJ_DIM + EMBED_DIM:]),
        "hid_b": b(p["hidden_b"]),
        # combined weight rows ordered [lab(32), roi(64), aug_hidden(32)]
        "cw_lab": w(comb_rows(0, EMBED_DIM)),
        "cw_roi": w(comb_rows(EMBED_DIM, EMBED_DIM + OBJ_DIM)),
        "cw_hid": w(comb_rows(EMBED_DIM + OBJ_DIM, EMBED_DIM + OBJ_DIM + HIDDEN_DIM)),
        "comb_b": b(comb_b),
        "spt1_w": w(p["spt1_w"]), "spt1_b": b(p["spt1_b"]),
        "spt2_w": w(p["spt2_w"]), "spt2_b": b(p["spt2_b"]),
        "fin_w": w(p["fin_w"]), "fin_b": b(p["fin_b"]),
        "up_w": w(p["union_up_w"]), "up_b": b(p["union_up_b"]),
    }


# ----------------------------- forward ----------------------------------------
def pairwise_feature_extractor_forward(packed, inst_roi_feats, union_features,
                                       boxes_list, img_sizes,
                                       predict_logits_list, pred_labels_list,
                                       rel_pair_idxs):
    # glue: concat ragged per-image tensors, lane-pad box9, gather label embeds
    obj_logits = jnp.concatenate(predict_logits_list, axis=0)
    box9 = jnp.concatenate(
        [encode_box_info(b, s) for b, s in zip(boxes_list, img_sizes)], axis=0)
    box9p = jnp.concatenate(
        [box9, jnp.zeros((box9.shape[0], BOX9_PAD - box9.shape[1]), box9.dtype)],
        axis=1)
    obj_pred_labels = jnp.concatenate(pred_labels_list, axis=0)
    lab_emb = jnp.take(packed["w_label"], obj_pred_labels, axis=0)

    # fused object-side kernel -> (head||tail) reps (bf16, lane-dense 128) and
    # finalized object features
    fused, augment_obj_feat_out = obj_fused_forward(
        packed, inst_roi_feats, obj_logits, box9p, lab_emb)
    head_rep = fused[:, :HIDDEN_DIM]
    tail_rep = fused[:, HIDDEN_DIM:2 * HIDDEN_DIM]

    # glue: pairwise gathers + box-pair geometry (data-dependent indexing)
    obj_boxs = [get_box_info(b, True, s) for b, s in zip(boxes_list, img_sizes)]
    num_objs = [int(b.shape[0]) for b in boxes_list]
    offsets = np.cumsum([0] + num_objs[:-1])

    pair_feats_list, pair_geo_list = [], []
    for off, pair_idx, obox in zip(offsets, rel_pair_idxs, obj_boxs):
        hidx = pair_idx[:, 0] + off
        tidx = pair_idx[:, 1] + off
        pair_feats_list.append(
            jnp.concatenate([head_rep[hidx], tail_rep[tidx]], axis=-1))
        pair_geo_list.append(
            get_box_pair_info(obox[pair_idx[:, 0]], obox[pair_idx[:, 1]]))
    pair_feats = jnp.concatenate(pair_feats_list, axis=0)   # bf16, no cast op
    pair_geo = jnp.concatenate(pair_geo_list, axis=0)       # f32

    # fused relation-side kernel -> final relation features (union residual fused)
    rel_features = rel_fused_forward(packed, pair_feats, pair_geo, union_features)
    return augment_obj_feat_out, rel_features


# ----------------------------- plain-JAX reference -----------------------------
def reference_forward(params, inst_roi_feats, union_features, boxes_list,
                      img_sizes, predict_logits_list, pred_labels_list,
                      rel_pair_idxs):
    obj_logits = jnp.concatenate(predict_logits_list, 0)
    emb_dist = jax.nn.softmax(obj_logits, -1) @ params["w_embed_dist"]
    box9 = jnp.concatenate(
        [encode_box_info(b, s) for b, s in zip(boxes_list, img_sizes)], 0)
    s = params["bn_gamma"] / jnp.sqrt(params["bn_var"] + 1e-5)
    h = box9 @ params["pos_fc1_w"] + params["pos_fc1_b"]
    h = (h - params["bn_mean"]) * s + params["bn_beta"]
    pos = jax.nn.relu(h @ params["pos_fc2_w"] + params["pos_fc2_b"])
    obj_pre_rep = jnp.concatenate([inst_roi_feats, emb_dist, pos], -1)
    aug_hidden = obj_pre_rep @ params["hidden_w"] + params["hidden_b"]
    lab_emb = params["w_embed_label"][jnp.concatenate(pred_labels_list, 0)]
    augment_obj_feat = jnp.concatenate([lab_emb, inst_roi_feats, aug_hidden], -1)
    fused = augment_obj_feat @ params["updim_w"] + params["updim_b"]
    head, tail = fused[:, :HIDDEN_DIM], fused[:, HIDDEN_DIM:]
    obj_boxs = [get_box_info(b, True, sz) for b, sz in zip(boxes_list, img_sizes)]
    num_objs = [int(b.shape[0]) for b in boxes_list]
    offsets = np.cumsum([0] + num_objs[:-1])
    pf, pg = [], []
    for off, pidx, obox in zip(offsets, rel_pair_idxs, obj_boxs):
        pf.append(jnp.concatenate([head[pidx[:, 0] + off], tail[pidx[:, 1] + off]], -1))
        pg.append(get_box_pair_info(obox[pidx[:, 0]], obox[pidx[:, 1]]))
    pair_feats = jnp.concatenate(pf, 0)
    pair_geo = jnp.concatenate(pg, 0)
    s1 = jax.nn.relu(pair_geo @ params["spt1_w"] + params["spt1_b"])
    s2 = jax.nn.relu(s1 @ params["spt2_w"] + params["spt2_b"])
    rel = jax.nn.relu((pair_feats * s2) @ params["fin_w"] + params["fin_b"])
    rel = union_features @ params["union_up_w"] + params["union_up_b"] + rel
    aug_out = jax.nn.relu(augment_obj_feat @ params["aug_fin_w"] + params["aug_fin_b"])
    return aug_out, rel


# ----------------------------- example / main ----------------------------------
def make_boxes(key, n, size):
    w, h = size
    k1, k2, k3, k4 = jax.random.split(key, 4)
    x1 = jax.random.uniform(k1, (n,), minval=0.0, maxval=0.5 * w)
    y1 = jax.random.uniform(k2, (n,), minval=0.0, maxval=0.5 * h)
    bw = jax.random.uniform(k3, (n,), minval=10.0, maxval=0.4 * w)
    bh = jax.random.uniform(k4, (n,), minval=10.0, maxval=0.4 * h)
    return jnp.stack([x1, y1, x1 + bw, y1 + bh], axis=1).astype(jnp.float32)


if __name__ == "__main__":
    key = jax.random.PRNGKey(0)
    kp, kroi, kuni, kb0, kb1, kl0, kl1, klab = jax.random.split(key, 8)

    params = init_params(kp)
    packed = pack_params(params)

    n_obj = NUM_IMAGES * OBJS_PER_IMG
    n_rel = NUM_IMAGES * RELS_PER_IMG
    img_sizes = [(640.0, 480.0), (600.0, 400.0)]

    inst_roi_feats = jax.random.normal(kroi, (n_obj, OBJ_DIM), jnp.float32)
    union_features = jax.random.normal(kuni, (n_rel, OBJ_DIM), jnp.float32)
    boxes_list = [make_boxes(kb0, OBJS_PER_IMG, img_sizes[0]),
                  make_boxes(kb1, OBJS_PER_IMG, img_sizes[1])]
    predict_logits_list = [
        jax.random.normal(kl0, (OBJS_PER_IMG, NUM_OBJ_CLASSES), jnp.float32),
        jax.random.normal(kl1, (OBJS_PER_IMG, NUM_OBJ_CLASSES), jnp.float32)]
    pred_labels_list = [
        jax.random.randint(klab, (OBJS_PER_IMG,), 0, NUM_OBJ_CLASSES, jnp.int32),
        jax.random.randint(jax.random.fold_in(klab, 1), (OBJS_PER_IMG,), 0,
                           NUM_OBJ_CLASSES, jnp.int32)]
    pairs = jnp.array([[0, 1], [1, 0], [0, 2], [2, 0],
                       [1, 2], [2, 3], [3, 1], [3, 2]], jnp.int32)
    rel_pair_idxs = [pairs, pairs]

    aug_obj_feat, rel_features = pairwise_feature_extractor_forward(
        packed, inst_roi_feats, union_features, boxes_list, img_sizes,
        predict_logits_list, pred_labels_list, rel_pair_idxs)
    jax.block_until_ready((aug_obj_feat, rel_features))

    assert aug_obj_feat.shape == (n_obj, POOLING_DIM)
    assert rel_features.shape == (n_rel, POOLING_DIM)

    # correctness check vs plain-JAX f32 reference (loose tol for bf16 matmuls)
    ref_aug, ref_rel = reference_forward(
        params, inst_roi_feats, union_features, boxes_list, img_sizes,
        predict_logits_list, pred_labels_list, rel_pair_idxs)
    np.testing.assert_allclose(np.asarray(aug_obj_feat), np.asarray(ref_aug),
                               rtol=0.1, atol=0.1)
    np.testing.assert_allclose(np.asarray(rel_features), np.asarray(ref_rel),
                               rtol=0.1, atol=0.1)
    print("KERNEL_OK")
</pallas_src>

<mosaic_0001>
module attributes {stable_mosaic.version = 11 : i64} {
  func.func @_obj_fused_kernel(%arg0: i32, %arg1: memref<8x64xf32, #tpu.memory_space<vmem>>, %arg2: memref<8x16xf32, #tpu.memory_space<vmem>>, %arg3: memref<8x128xf32, #tpu.memory_space<vmem>>, %arg4: memref<8x32xf32, #tpu.memory_space<vmem>>, %arg5: memref<16x32xbf16, #tpu.memory_space<vmem>>, %arg6: memref<128x32xbf16, #tpu.memory_space<vmem>>, %arg7: memref<1x32xf32, #tpu.memory_space<vmem>>, %arg8: memref<32x128xbf16, #tpu.memory_space<vmem>>, %arg9: memref<1x128xf32, #tpu.memory_space<vmem>>, %arg10: memref<64x32xbf16, #tpu.memory_space<vmem>>, %arg11: memref<32x32xbf16, #tpu.memory_space<vmem>>, %arg12: memref<128x32xbf16, #tpu.memory_space<vmem>>, %arg13: memref<1x32xf32, #tpu.memory_space<vmem>>, %arg14: memref<32x256xbf16, #tpu.memory_space<vmem>>, %arg15: memref<64x256xbf16, #tpu.memory_space<vmem>>, %arg16: memref<32x256xbf16, #tpu.memory_space<vmem>>, %arg17: memref<1x256xf32, #tpu.memory_space<vmem>>, %arg18: memref<8x128xbf16, #tpu.memory_space<vmem>>, %arg19: memref<8x128xf32, #tpu.memory_space<vmem>>) attributes {dimension_semantics = [#tpu.dimension_semantics<parallel>], iteration_bounds = array<i64: 1>, scalar_prefetch = 0 : i64, scratch_operands = 0 : i64, tpu.core_type = #tpu.core_type<tc>, window_params = [{transform_indices = @transform_0, window_bounds = array<i64: 8, 64>}, {transform_indices = @transform_1, window_bounds = array<i64: 8, 16>}, {transform_indices = @transform_2, window_bounds = array<i64: 8, 128>}, {transform_indices = @transform_3, window_bounds = array<i64: 8, 32>}, {pipeline_mode = #tpu.pipeline_mode<synchronous>, transform_indices = @transform_4, window_bounds = array<i64: 16, 32>}, {pipeline_mode = #tpu.pipeline_mode<synchronous>, transform_indices = @transform_5, window_bounds = array<i64: 128, 32>}, {pipeline_mode = #tpu.pipeline_mode<synchronous>, transform_indices = @transform_6, window_bounds = array<i64: 1, 32>}, {pipeline_mode = #tpu.pipeline_mode<synchronous>, transform_indices = @transform_7, window_bounds = array<i64: 32, 128>}, {pipeline_mode = #tpu.pipeline_mode<synchronous>, transform_indices = @transform_8, window_bounds = array<i64: 1, 128>}, {pipeline_mode = #tpu.pipeline_mode<synchronous>, transform_indices = @transform_9, window_bounds = array<i64: 64, 32>}, {pipeline_mode = #tpu.pipeline_mode<synchronous>, transform_indices = @transform_10, window_bounds = array<i64: 32, 32>}, {pipeline_mode = #tpu.pipeline_mode<synchronous>, transform_indices = @transform_11, window_bounds = array<i64: 128, 32>}, {pipeline_mode = #tpu.pipeline_mode<synchronous>, transform_indices = @transform_12, window_bounds = array<i64: 1, 32>}, {pipeline_mode = #tpu.pipeline_mode<synchronous>, transform_indices = @transform_13, window_bounds = array<i64: 32, 256>}, {pipeline_mode = #tpu.pipeline_mode<synchronous>, transform_indices = @transform_14, window_bounds = array<i64: 64, 256>}, {pipeline_mode = #tpu.pipeline_mode<synchronous>, transform_indices = @transform_15, window_bounds = array<i64: 32, 256>}, {pipeline_mode = #tpu.pipeline_mode<synchronous>, transform_indices = @transform_16, window_bounds = array<i64: 1, 256>}, {transform_indices = @transform_17, window_bounds = array<i64: 8, 128>}, {transform_indices = @transform_18, window_bounds = array<i64: 8, 128>}]} {
    %c0 = arith.constant 0 : index
    %c0_0 = arith.constant 0 : index
    %0 = vector.load %arg1[%c0, %c0_0] : memref<8x64xf32, #tpu.memory_space<vmem>>, vector<8x64xf32>
    %1 = arith.truncf %0 : vector<8x64xf32> to vector<8x64xbf16>
    %c0_1 = arith.constant 0 : index
    %c0_2 = arith.constant 0 : index
    %2 = vector.load %arg4[%c0_1, %c0_2] : memref<8x32xf32, #tpu.memory_space<vmem>>, vector<8x32xf32>
    %3 = arith.truncf %2 : vector<8x32xf32> to vector<8x32xbf16>
    %c0_3 = arith.constant 0 : index
    %c0_4 = arith.constant 0 : index
    %4 = vector.load %arg2[%c0_3, %c0_4] : memref<8x16xf32, #tpu.memory_space<vmem>>, vector<8x16xf32>
    %cst = arith.constant dense<0xFF800000> : vector<8xf32>
    %5 = vector.multi_reduction <maximumf>, %4, %cst [1] : vector<8x16xf32> to vector<8xf32>
    %6 = vector.shape_cast %5 : vector<8xf32> to vector<8x1xf32>
    %7 = vector.broadcast %6 : vector<8x1xf32> to vector<8x16xf32>
    %8 = arith.subf %4, %7 : vector<8x16xf32>
    %9 = math.exp %8 : vector<8x16xf32>
    %cst_5 = arith.constant dense<0.000000e+00> : vector<8xf32>
    %10 = vector.multi_reduction <add>, %9, %cst_5 [1] : vector<8x16xf32> to vector<8xf32>
    %11 = vector.shape_cast %10 : vector<8xf32> to vector<8x1xf32>
    %12 = tpu.reciprocal %11 {approx = true} : vector<8x1xf32> -> vector<8x1xf32>
    %13 = vector.broadcast %12 : vector<8x1xf32> to vector<8x16xf32>
    %14 = arith.mulf %9, %13 : vector<8x16xf32>
    %15 = arith.truncf %14 : vector<8x16xf32> to vector<8x16xbf16>
    %c0_6 = arith.constant 0 : index
    %c0_7 = arith.constant 0 : index
    %16 = vector.load %arg5[%c0_6, %c0_7] : memref<16x32xbf16, #tpu.memory_space<vmem>>, vector<16x32xbf16>
    %cst_8 = arith.constant dense<0.000000e+00> : vector<8x32xf32>
    %17 = tpu.matmul %15, %16, %cst_8 {dimension_numbers = #tpu.dot_dimension_numbers<[1], [0], [0], [1], [0, 0, 1, 1], [], []>} : vector<8x16xbf16>, vector<16x32xbf16>, vector<8x32xf32> -> vector<8x32xf32>
    %c0_9 = arith.constant 0 : index
    %c0_10 = arith.constant 0 : index
    %18 = vector.load %arg3[%c0_9, %c0_10] : memref<8x128xf32, #tpu.memory_space<vmem>>, vector<8x128xf32>
    %19 = arith.truncf %18 : vector<8x128xf32> to vector<8x128xbf16>
    %c0_11 = arith.constant 0 : index
    %c0_12 = arith.constant 0 : index
    %20 = vector.load %arg6[%c0_11, %c0_12] : memref<128x32xbf16, #tpu.memory_space<vmem>>, vector<128x32xbf16>
    %cst_13 = arith.constant dense<0.000000e+00> : vector<8x32xf32>
    %21 = tpu.matmul %19, %20, %cst_13 {dimension_numbers = #tpu.dot_dimension_numbers<[1], [0], [0], [1], [0, 0, 1, 1], [], []>} : vector<8x128xbf16>, vector<128x32xbf16>, vector<8x32xf32> -> vector<8x32xf32>
    %c0_14 = arith.constant 0 : index
    %c0_15 = arith.constant 0 : index
    %22 = vector.load %arg7[%c0_14, %c0_15] : memref<1x32xf32, #tpu.memory_space<vmem>>, vector<1x32xf32>
    %23 = vector.broadcast %22 : vector<1x32xf32> to vector<8x32xf32>
    %24 = arith.addf %21, %23 : vector<8x32xf32>
    %25 = arith.truncf %24 : vector<8x32xf32> to vector<8x32xbf16>
    %c0_16 = arith.constant 0 : index
    %c0_17 = arith.constant 0 : index
    %26 = vector.load %arg8[%c0_16, %c0_17] : memref<32x128xbf16, #tpu.memory_space<vmem>>, vector<32x128xbf16>
    %cst_18 = arith.constant dense<0.000000e+00> : vector<8x128xf32>
    %27 = tpu.matmul %25, %26, %cst_18 {dimension_numbers = #tpu.dot_dimension_numbers<[1], [0], [0], [1], [0, 0, 1, 1], [], []>} : vector<8x32xbf16>, vector<32x128xbf16>, vector<8x128xf32> -> vector<8x128xf32>
    %c0_19 = arith.constant 0 : index
    %c0_20 = arith.constant 0 : index
    %28 = vector.load %arg9[%c0_19, %c0_20] : memref<1x128xf32, #tpu.memory_space<vmem>>, vector<1x128xf32>
    %29 = vector.broadcast %28 : vector<1x128xf32> to vector<8x128xf32>
    %30 = arith.addf %27, %29 : vector<8x128xf32>
    %cst_21 = arith.constant 0.000000e+00 : f32
    %31 = vector.broadcast %cst_21 : f32 to vector<8x128xf32>
    %32 = arith.maximumf %30, %31 : vector<8x128xf32>
    %c0_22 = arith.constant 0 : index
    %c0_23 = arith.constant 0 : index
    %33 = vector.load %arg10[%c0_22, %c0_23] : memref<64x32xbf16, #tpu.memory_space<vmem>>, vector<64x32xbf16>
    %cst_24 = arith.constant dense<0.000000e+00> : vector<8x32xf32>
    %34 = tpu.matmul %1, %33, %cst_24 {dimension_numbers = #tpu.dot_dimension_numbers<[1], [0], [0], [1], [0, 0, 1, 1], [], []>} : vector<8x64xbf16>, vector<64x32xbf16>, vector<8x32xf32> -> vector<8x32xf32>
    %35 = arith.truncf %17 : vector<8x32xf32> to vector<8x32xbf16>
    %c0_25 = arith.constant 0 : index
    %c0_26 = arith.constant 0 : index
    %36 = vector.load %arg11[%c0_25, %c0_26] : memref<32x32xbf16, #tpu.memory_space<vmem>>, vector<32x32xbf16>
    %cst_27 = arith.constant dense<0.000000e+00> : vector<8x32xf32>
    %37 = tpu.matmul %35, %36, %cst_27 {dimension_numbers = #tpu.dot_dimension_numbers<[1], [0], [0], [1], [0, 0, 1, 1], [], []>} : vector<8x32xbf16>, vector<32x32xbf16>, vector<8x32xf32> -> vector<8x32xf32>
    %38 = arith.addf %34, %37 : vector<8x32xf32>
    %39 = arith.truncf %32 : vector<8x128xf32> to vector<8x128xbf16>
    %c0_28 = arith.constant 0 : index
    %c0_29 = arith.constant 0 : index
    %40 = vector.load %arg12[%c0_28, %c0_29] : memref<128x32xbf16, #tpu.memory_space<vmem>>, vector<128x32xbf16>
    %cst_30 = arith.constant dense<0.000000e+00> : vector<8x32xf32>
    %41 = tpu.matmul %39, %40, %cst_30 {dimension_numbers = #tpu.dot_dimension_numbers<[1], [0], [0], [1], [0, 0, 1, 1], [], []>} : vector<8x128xbf16>, vector<128x32xbf16>, vector<8x32xf32> -> vector<8x32xf32>
    %42 = arith.addf %38, %41 : vector<8x32xf32>
    %c0_31 = arith.constant 0 : index
    %c0_32 = arith.constant 0 : index
    %43 = vector.load %arg13[%c0_31, %c0_32] : memref<1x32xf32, #tpu.memory_space<vmem>>, vector<1x32xf32>
    %44 = vector.broadcast %43 : vector<1x32xf32> to vector<8x32xf32>
    %45 = arith.addf %42, %44 : vector<8x32xf32>
    %46 = arith.truncf %45 : vector<8x32xf32> to vector<8x32xbf16>
    %c0_33 = arith.constant 0 : index
    %c0_34 = arith.constant 0 : index
    %47 = vector.load %arg14[%c0_33, %c0_34] : memref<32x256xbf16, #tpu.memory_space<vmem>>, vector<32x256xbf16>
    %cst_35 = arith.constant dense<0.000000e+00> : vector<8x256xf32>
    %48 = tpu.matmul %3, %47, %cst_35 {dimension_numbers = #tpu.dot_dimension_numbers<[1], [0], [0], [1], [0, 0, 1, 1], [], []>} : vector<8x32xbf16>, vector<32x256xbf16>, vector<8x256xf32> -> vector<8x256xf32>
    %c0_36 = arith.constant 0 : index
    %c0_37 = arith.constant 0 : index
    %49 = vector.load %arg15[%c0_36, %c0_37] : memref<64x256xbf16, #tpu.memory_space<vmem>>, vector<64x256xbf16>
    %cst_38 = arith.constant dense<0.000000e+00> : vector<8x256xf32>
    %50 = tpu.matmul %1, %49, %cst_38 {dimension_numbers = #tpu.dot_dimension_numbers<[1], [0], [0], [1], [0, 0, 1, 1], [], []>} : vector<8x64xbf16>, vector<64x256xbf16>, vector<8x256xf32> -> vector<8x256xf32>
    %51 = arith.addf %48, %50 : vector<8x256xf32>
    %c0_39 = arith.constant 0 : index
    %c0_40 = arith.constant 0 : index
    %52 = vector.load %arg16[%c0_39, %c0_40] : memref<32x256xbf16, #tpu.memory_space<vmem>>, vector<32x256xbf16>
    %cst_41 = arith.constant dense<0.000000e+00> : vector<8x256xf32>
    %53 = tpu.matmul %46, %52, %cst_41 {dimension_numbers = #tpu.dot_dimension_numbers<[1], [0], [0], [1], [0, 0, 1, 1], [], []>} : vector<8x32xbf16>, vector<32x256xbf16>, vector<8x256xf32> -> vector<8x256xf32>
    %54 = arith.addf %51, %53 : vector<8x256xf32>
    %c0_42 = arith.constant 0 : index
    %c0_43 = arith.constant 0 : index
    %55 = vector.load %arg17[%c0_42, %c0_43] : memref<1x256xf32, #tpu.memory_space<vmem>>, vector<1x256xf32>
    %56 = vector.broadcast %55 : vector<1x256xf32> to vector<8x256xf32>
    %57 = arith.addf %54, %56 : vector<8x256xf32>
    %58 = vector.extract_strided_slice %57 {offsets = [0, 0], sizes = [8, 128], strides = [1, 1]} : vector<8x256xf32> to vector<8x128xf32>
    %cst_44 = arith.constant 0.000000e+00 : f32
    %59 = vector.broadcast %cst_44 : f32 to vector<8x128xf32>
    %60 = arith.maximumf %58, %59 : vector<8x128xf32>
    %c0_45 = arith.constant 0 : index
    %c0_46 = arith.constant 0 : index
    %61 = vector.load %arg19[%c0_45, %c0_46] : memref<8x128xf32, #tpu.memory_space<vmem>>, vector<8x128xf32>
    tpu.vector_store %arg19[%c0_45, %c0_46], %60 {strides = array<i32>} : memref<8x128xf32, #tpu.memory_space<vmem>>, vector<8x128xf32>,
    %62 = vector.extract_strided_slice %57 {offsets = [0, 128], sizes = [8, 128], strides = [1, 1]} : vector<8x256xf32> to vector<8x128xf32>
    %63 = arith.truncf %62 : vector<8x128xf32> to vector<8x128xbf16>
    %c0_47 = arith.constant 0 : index
    %c0_48 = arith.constant 0 : index
    %64 = vector.load %arg18[%c0_47, %c0_48] : memref<8x128xbf16, #tpu.memory_space<vmem>>, vector<8x128xbf16>
    tpu.vector_store %arg18[%c0_47, %c0_48], %63 {strides = array<i32>} : memref<8x128xbf16, #tpu.memory_space<vmem>>, vector<8x128xbf16>,
    return
  }
  func.func @transform_0(%arg0: i32) -> (i32, i32) {
    %c0_i32 = arith.constant 0 : i32
    %c0_i32_0 = arith.constant 0 : i32
    return %arg0, %c0_i32 : i32, i32
  }
  func.func @transform_1(%arg0: i32) -> (i32, i32) {
    %c0_i32 = arith.constant 0 : i32
    %c0_i32_0 = arith.constant 0 : i32
    return %arg0, %c0_i32 : i32, i32
  }
  func.func @transform_2(%arg0: i32) -> (i32, i32) {
    %c0_i32 = arith.constant 0 : i32
    %c0_i32_0 = arith.constant 0 : i32
    return %arg0, %c0_i32 : i32, i32
  }
  func.func @transform_3(%arg0: i32) -> (i32, i32) {
    %c0_i32 = arith.constant 0 : i32
    %c0_i32_0 = arith.constant 0 : i32
    return %arg0, %c0_i32 : i32, i32
  }
  func.func @transform_4(%arg0: i32) -> (i32, i32) {
    %c0_i32 = arith.constant 0 : i32
    %c0_i32_0 = arith.constant 0 : i32
    %c0_i32_1 = arith.constant 0 : i32
    return %c0_i32, %c0_i32_0 : i32, i32
  }
  func.func @transform_5(%arg0: i32) -> (i32, i32) {
    %c0_i32 = arith.constant 0 : i32
    %c0_i32_0 = arith.constant 0 : i32
    %c0_i32_1 = arith.constant 0 : i32
    return %c0_i32, %c0_i32_0 : i32, i32
  }
  func.func @transform_6(%arg0: i32) -> (i32, i32) {
    %c0_i32 = arith.constant 0 : i32
    %c0_i32_0 = arith.constant 0 : i32
    %c0_i32_1 = arith.constant 0 : i32
    return %c0_i32, %c0_i32_0 : i32, i32
  }
  func.func @transform_7(%arg0: i32) -> (i32, i32) {
    %c0_i32 = arith.constant 0 : i32
    %c0_i32_0 = arith.constant 0 : i32
    %c0_i32_1 = arith.constant 0 : i32
    return %c0_i32, %c0_i32_0 : i32, i32
  }
  func.func @transform_8(%arg0: i32) -> (i32, i32) {
    %c0_i32 = arith.constant 0 : i32
    %c0_i32_0 = arith.constant 0 : i32
    %c0_i32_1 = arith.constant 0 : i32
    return %c0_i32, %c0_i32_0 : i32, i32
  }
  func.func @transform_9(%arg0: i32) -> (i32, i32) {
    %c0_i32 = arith.constant 0 : i32
    %c0_i32_0 = arith.constant 0 : i32
    %c0_i32_1 = arith.constant 0 : i32
    return %c0_i32, %c0_i32_0 : i32, i32
  }
  func.func @transform_10(%arg0: i32) -> (i32, i32) {
    %c0_i32 = arith.constant 0 : i32
    %c0_i32_0 = arith.constant 0 : i32
    %c0_i32_1 = arith.constant 0 : i32
    return %c0_i32, %c0_i32_0 : i32, i32
  }
  func.func @transform_11(%arg0: i32) -> (i32, i32) {
    %c0_i32 = arith.constant 0 : i32
    %c0_i32_0 = arith.constant 0 : i32
    %c0_i32_1 = arith.constant 0 : i32
    return %c0_i32, %c0_i32_0 : i32, i32
  }
  func.func @transform_12(%arg0: i32) -> (i32, i32) {
    %c0_i32 = arith.constant 0 : i32
    %c0_i32_0 = arith.constant 0 : i32
    %c0_i32_1 = arith.constant 0 : i32
    return %c0_i32, %c0_i32_0 : i32, i32
  }
  func.func @transform_13(%arg0: i32) -> (i32, i32) {
    %c0_i32 = arith.constant 0 : i32
    %c0_i32_0 = arith.constant 0 : i32
    %c0_i32_1 = arith.constant 0 : i32
    return %c0_i32, %c0_i32_0 : i32, i32
  }
  func.func @transform_14(%arg0: i32) -> (i32, i32) {
    %c0_i32 = arith.constant 0 : i32
    %c0_i32_0 = arith.constant 0 : i32
    %c0_i32_1 = arith.constant 0 : i32
    return %c0_i32, %c0_i32_0 : i32, i32
  }
  func.func @transform_15(%arg0: i32) -> (i32, i32) {
    %c0_i32 = arith.constant 0 : i32
    %c0_i32_0 = arith.constant 0 : i32
    %c0_i32_1 = arith.constant 0 : i32
    return %c0_i32, %c0_i32_0 : i32, i32
  }
  func.func @transform_16(%arg0: i32) -> (i32, i32) {
    %c0_i32 = arith.constant 0 : i32
    %c0_i32_0 = arith.constant 0 : i32
    %c0_i32_1 = arith.constant 0 : i32
    return %c0_i32, %c0_i32_0 : i32, i32
  }
  func.func @transform_17(%arg0: i32) -> (i32, i32) {
    %c0_i32 = arith.constant 0 : i32
    %c0_i32_0 = arith.constant 0 : i32
    return %arg0, %c0_i32 : i32, i32
  }
  func.func @transform_18(%arg0: i32) -> (i32, i32) {
    %c0_i32 = arith.constant 0 : i32
    %c0_i32_0 = arith.constant 0 : i32
    return %arg0, %c0_i32 : i32, i32
  }
}

</mosaic_0001>

<bundles_post_ra>
// kernel: tpu_custom_call.1
= control target key start
LH: loop header
LB: loop body
LE: loop exit
PB: predicated region body
PF: predicated region fallthrough
CT: control target
= control target key end

     0   :  { %s1524_s0 = inlined_call_operand.vmem [shape: f32[8,64], index: 0, kind: input, shape index: {}]   ;;  %s1525_s1 = inlined_call_operand.vmem [shape: f32[8,16], index: 1, kind: input, shape index: {}]   ;;  %s1526_s2 = inlined_call_operand.hbm [shape: f32[8,128], index: 2, kind: input, shape index: {}]   ;;  %s1527_s3 = inlined_call_operand.vmem [shape: f32[8,32], index: 3, kind: input, shape index: {}]   ;;  %s1528_s4 = inlined_call_operand.hbm [shape: bf16[16,32], index: 4, kind: input, shape index: {}]   ;;  %s1529_s5 = inlined_call_operand.vmem [shape: bf16[128,32], index: 5, kind: input, shape index: {}]   ;;  %s1530_s6 = inlined_call_operand.vmem [shape: f32[1,32], index: 6, kind: input, shape index: {}]   ;;  %s1531_s7 = inlined_call_operand.vmem [shape: bf16[32,128], index: 7, kind: input, shape index: {}]   ;;  %s1532_s8 = inlined_call_operand.vmem [shape: f32[1,128], index: 8, kind: input, shape index: {}]   ;;  %s1533_s9 = inlined_call_operand.vmem [shape: bf16[64,32], index: 9, kind: input, shape index: {}]   ;;  %s1534_s10 = inlined_call_operand.vmem [shape: bf16[32,32], index: 10, kind: input, shape index: {}]   ;;  %s1535_s11 = inlined_call_operand.vmem [shape: bf16[128,32], index: 11, kind: input, shape index: {}]   ;;  %s1536_s12 = inlined_call_operand.vmem [shape: f32[1,32], index: 12, kind: input, shape index: {}]   ;;  %s1537_s13 = inlined_call_operand.vmem [shape: bf16[32,256], index: 13, kind: input, shape index: {}]   ;;  %s1538_s14 = inlined_call_operand.vmem [shape: bf16[64,256], index: 14, kind: input, shape index: {}]   ;;  %s1539_s15 = inlined_call_operand.vmem [shape: bf16[32,256], index: 15, kind: input, shape index: {}]   ;;  %s1540_s16 = inlined_call_operand.vmem [shape: f32[1,256], index: 16, kind: input, shape index: {}]   ;;  %s1541_s17 = inlined_call_operand.hbm [shape: bf16[8,128], index: 17, kind: output, shape index: {0}]   ;;  %s1542_s18 = inlined_call_operand.hbm [shape: f32[8,128], index: 18, kind: output, shape index: {1}]  }
   0x1   :  { %1544 = sst [smem:[#allocation14_spill]] %s1524_s0 }
   0x2   :  { %1545 = sst [smem:[#allocation15_spill]] %s1525_s1 }
   0x3   :  { %1546 = sst [smem:[#allocation16_spill]] %s1526_s2 }
   0x4   :  { %24 = vsyncpa [#allocation3], 0 }
   0x5   :  { %25 = vsyncpa [#allocation6], 0 }
   0x6   :  { %26 = vsyncpa [#allocation4], 0 }
   0x7   :  { %27 = vsyncpa [#allocation9], 0  ;;  %s1178_s27 = smov [#allocation2]   ;;  %s1179_s29 = smov [#allocation5]  }
   0x8   :  { %s38_s28 = sshll.u32 %s1178_s27, 4  ;;  %s49_s30 = sshll.u32 %s1179_s29, 4  ;;  %s39_s28 = int_to_ptr.vmem [resolvable:$true] %s38_s28  ;;  %s1282_s30 = int_to_ptr.vmem [resolvable:$true] %s49_s30 }
   0x9   :  { %s1547_s1 = sld [smem:[#allocation16_spill]] }
   0xf   :  { %s1082_s20 = scalar_lea.hbm %s1547_s1, 128 }
  0x10   :  { %p1083_p0 = scmp.ne.s32.totalorder %s1547_s1, %s1082_s20  ;;  %p1086_p1 = scmp.lt.u32.totalorder %s1082_s20, %s1547_s1 }
  0x12   :  { %p1088_p2 = pnand %p1086_p1, %p1083_p0 }
  0x14   :  { %1091 = shalt.err (!%p1088_p2)
}
  0x15   :  { %s1092_s24 = scalar_lea.vmem %s39_s28, 128  ;;  %p1097_p4 = scmp.lt.s32.totalorder %s39_s28, %s39_s28 }
  0x16   :  { %p1093_p3 = scmp.ne.s32.totalorder %s39_s28, %s1092_s24  ;;  %p1098_p5 = scmp.lt.s32.totalorder %s1092_s24, %s1092_s24 }
  0x18   :  { %p1099_p6 = por %p1098_p5, %p1097_p4 }
  0x1a   :  { %p1100_p7 = pnand %p1099_p6, %p1093_p3 }
  0x1c   :  { %1103 = shalt.err (!%p1100_p7)
}
  0x1d   :  { %41 = dma.hbm_to_vmem [thread:$0]  %s1547_s1, 128, %s39_s28, [#allocation3]  }
  0x1e   :  { %s1104_s0 = scalar_lea.hbm %s1528_s4, 128 }
  0x1f   :  { %p1105_p8 = scmp.ne.s32.totalorder %s1528_s4, %s1104_s0  ;;  %p1108_p9 = scmp.lt.u32.totalorder %s1104_s0, %s1528_s4 }
  0x21   :  { %p1110_p10 = pnand %p1108_p9, %p1105_p8 }
  0x23   :  { %1113 = shalt.err (!%p1110_p10)
}
  0x24   :  { %s1114_s2 = scalar_lea.vmem %s1282_s30, 128  ;;  %p1119_p12 = scmp.lt.s32.totalorder %s1282_s30, %s1282_s30 }
  0x25   :  { %p1115_p11 = scmp.ne.s32.totalorder %s1282_s30, %s1114_s2  ;;  %p1120_p13 = scmp.lt.s32.totalorder %s1114_s2, %s1114_s2 }
  0x27   :  { %p1121_p0 = por %p1120_p13, %p1119_p12 }
  0x29   :  { %p1122_p1 = pnand %p1121_p0, %p1115_p11 }
  0x2b   :  { %1125 = shalt.err (!%p1122_p1)
}
  0x2c   :  { %s1180_s28 = smov 64   ;;  %s1181_s1 = smov 4  }
  0x2d   :  { %55 = dma.hbm_to_vmem [thread:$0]  %s1528_s4, 128, %s1282_s30, [#allocation6], %s1180_s28, %s1180_s28, %s1181_s1  }
  0x2e   :  { %1170 = dma.done.wait [#allocation3], 128  }
  0x2f   :  { %1171 = vsyncadd [#allocation3], 4294967168 }
  0x30   :  { %1172 = dma.done.wait [#allocation6], 128  }
  0x31   :  { %1173 = vsyncadd [#allocation6], 4294967168  ;;  %v1182_v0 = vmov 0.0   ;;  %vm1183_vm0 = vmmov 0   ;;  %vm92_vm1 = vcmask 130048   ;;  %s1548_s4 = sld [smem:[#allocation15_spill]] }
  0x32   :  { %952 = vmatprep.subr.bf16.mxu1 %v1182_v0  ;;  %968 = vmatprep.mubr.msk.bf16.mxu1 %vm1183_vm0, %v1182_v0  ;;  %v1029_v3 = vld [vmem:[%s1529_s5] sm:$0xff]   ;;  %v1030_v4 = vld [vmem:[%s1529_s5 + $0x8] sm:$0xff]   ;;  %v1031_v5 = vld [vmem:[%s1529_s5 + $0x10] sm:$0xff]   ;;  %vm293_vm2 = vcmask 261120   ;;  %vm430_vm3 = vcmask 523264   ;;  %s1185_s21 = smov [#allocation8]  }
  0x33   :  { %946 = vmatprep.subr.bf16.mxu0 %v1182_v0  ;;  %948 = vmatprep.mubr.msk.bf16.mxu0 %vm1183_vm0, %v1182_v0  ;;  %v1032_v6 = vld [vmem:[%s1529_s5 + $0x18] sm:$0xff]   ;;  %v1033_v7 = vld [vmem:[%s1529_s5 + $0x20] sm:$0xff]   ;;  %v1034_v8 = vld [vmem:[%s1529_s5 + $0x28] sm:$0xff]   ;;  %s850_s20 = sshll.u32 %s1185_s21, 4  ;;  %s1186_s22 = smov [#allocation7]   ;;  %s851_s20 = int_to_ptr.vmem [resolvable:$true] %s850_s20 }
  0x34   :  { %953 = vmatpush3.bf16.msra.mxu1 %v1029_v3  ;;  %v1035_v9 = vld [vmem:[%s1529_s5 + $0x30] sm:$0xff]   ;;  %v1036_v10 = vld [vmem:[%s1529_s5 + $0x38] sm:$0xff]   ;;  %v156_v11 = vld [vmem:[#allocation2] sm:$0xff]  ;;  %s840_s2 = sshll.u32 %s1186_s22, 4  ;;  %p1131_p3 = scmp.lt.s32.totalorder %s851_s20, %s851_s20  ;;  %s841_s2 = int_to_ptr.vmem [resolvable:$true] %s840_s2 }
  0x35   :  { %954 = vmatprep.subr.bf16.mxu1 %v1182_v0  ;;  %v157_v12 = vpack.c.bf16 %v156_v11, %v156_v11  ;;  %v1037_v18 = vld [vmem:[#allocation5] sm:$0xff]   ;;  %v1040_v19 = vld [vmem:[%s1535_s11] sm:$0xff]   ;;  %v1042_v21 = vld [vmem:[%s1535_s11 + $0x10] sm:$0xff]  }
  0x36   :  { %947 = vmatpush3.bf16.msra.mxu0 %v1037_v18  ;;  %v1041_v20 = vld [vmem:[%s1535_s11 + $0x8] sm:$0xff]   ;;  %v1044_v22 = vld [vmem:[%s1535_s11 + $0x18] sm:$0xff]   ;;  %v1038_v30 = vld [vmem:[%s1531_s7] sm:$0xff]  }
  0x37   :  { %v91_v1 = vld [vmem:[%s1548_s4] sm:$0xff]  ;;  %972 = vmatprep.subr.bf16.mxu0 %v1182_v0  ;;  %v1039_v34 = vld [vmem:[%s1531_s7 + $0x8] sm:$0xff]   ;;  %v1050_v40 = vld [vmem:[%s1535_s11 + $0x30] sm:$0xff]  }
  0x38   :  { %v93_v2 = vsel %vm92_vm1, %v91_v1, -inf  ;;  %955 = vmatpush3.bf16.msra.mxu1 %v1030_v4  ;;  %v866_v31 = vld [vmem:[%s1530_s6] ss:$0 sm:$0xff]  ;;  %v1045_v37 = vld [vmem:[%s1534_s10 + $0x8] sm:$0xff]   ;;  %v1052_v41 = vld [vmem:[%s1535_s11 + $0x38] sm:$0xff]   ;;  %s1549_s6 = sld [smem:[#allocation14_spill]] }
  0x39   :  { %94 = vmax.xlane.f32.xlu0 %v93_v2  ;;  %956 = vmatprep.subr.bf16.mxu1 %v1182_v0  ;;  %v1043_v36 = vld [vmem:[%s1534_s10] sm:$0xff]   ;;  %v1048_v39 = vld [vmem:[%s1535_s11 + $0x28] sm:$0xff]   ;;  %v1051_v51 = vld [vmem:[%s1533_s9 + $0x10] sm:$0xff]  }
  0x3a   :  { %v1046_v38 = vld [vmem:[%s1535_s11 + $0x20] sm:$0xff]   ;;  %v1049_v48 = vld [vmem:[%s1533_s9 + $0x8] sm:$0xff]   ;;  %v1053_v57 = vld [vmem:[%s1533_s9 + $0x18] sm:$0xff]  }
  0x3b   :  { %v1047_v43 = vld [vmem:[%s1533_s9] sm:$0xff]   ;;  %v1059_v63 = vld [vmem:[%s1538_s14 + $0x14] ss:$8 sps:$4 sm:$0xff]  }
  0x3c   :  { %957 = vmatpush3.bf16.msra.mxu1 %v1031_v5  ;;  %v875_v49 = vld [vmem:[%s1532_s8] ss:$0 sm:$0xff]  ;;  %v1056_v60 = vld [vmem:[%s1538_s14 + $0x4] ss:$8 sps:$4 sm:$0xff]   ;;  %v1065_v4 = vld [vmem:[%s1538_s14 + $0x34] ss:$8 sps:$4 sm:$0xff]  }
  0x3d   :  { %958 = vmatprep.subr.bf16.mxu1 %v1182_v0  ;;  %v1054_v62 = vld [vmem:[%s1538_s14] ss:$8 sps:$4 sm:$0xff]   ;;  %v1062_v2 = vld [vmem:[%s1538_s14 + $0x24] ss:$8 sps:$4 sm:$0xff]   ;;  %v1063_v5 = vld [vmem:[%s1538_s14 + $0x30] ss:$8 sps:$4 sm:$0xff]  }
  0x3e   :  { %v87_v58 = vld [vmem:[%s1549_s6] sm:$0xff] }
  0x3f   :  { %v88_v61 = vpack.c.bf16 %v87_v58, %v87_v58  ;;  %v1060_v3 = vld [vmem:[%s1538_s14 + $0x20] ss:$8 sps:$4 sm:$0xff]  }
  0x40   :  { %959 = vmatpush3.bf16.msra.mxu1 %v1032_v6  ;;  %v1068_v6 = vld [vmem:[%s1537_s13 + $0x4] ss:$8 sps:$4 sm:$0xff]  }
  0x41   :  { %960 = vmatprep.subr.bf16.mxu1 %v1182_v0 }
  0x44   :  { %961 = vmatpush3.bf16.msra.mxu1 %v1033_v7  ;;  %v1066_v7 = vld [vmem:[%s1537_s13] ss:$8 sps:$4 sm:$0xff]  }
  0x45   :  { %962 = vmatprep.subr.bf16.mxu1 %v1182_v0 }
  0x48   :  { %963 = vmatpush3.bf16.msra.mxu1 %v1034_v8  ;;  %v1071_v8 = vld [vmem:[%s1537_s13 + $0x14] ss:$8 sps:$4 sm:$0xff]  }
  0x49   :  { %964 = vmatprep.subr.bf16.mxu1 %v1182_v0 }
  0x4c   :  { %965 = vmatpush3.bf16.msra.mxu1 %v1035_v9  ;;  %v1069_v9 = vld [vmem:[%s1537_s13 + $0x10] ss:$8 sps:$4 sm:$0xff]  }
  0x4d   :  { %966 = vmatprep.subr.bf16.mxu1 %v1182_v0 }
  0x50   :  { %967 = vmatpush3.bf16.msra.mxu1 %v1036_v10  ;;  %v89_v10 = vld [vmem:[%s1527_s3] sm:$0xff] }
  0x51   :  { %1000 = vmatprep.subr.bf16.mxu1 %v1182_v0  ;;  %v90_v11 = vpack.c.bf16 %v89_v10, %v89_v10 }
  0x53   :  { %969 = vmatmul.mubr.bf16.vlgmr.msra.gmra.mrb[0].mxu1 %v157_v12  ;;  %v1074_v12 = vld [vmem:[%s1539_s15 + $0x4] ss:$8 sps:$4 sm:$0xff]  }
  0x54   :  { %1016 = vmatprep.mubr.msk.bf16.mxu1 %vm1183_vm0, %v1182_v0  ;;  %1001 = vmatpush3.bf16.msra.mxu1 %v1040_v19 }
  0x55   :  { %1002 = vmatprep.subr.bf16.mxu1 %v1182_v0 }
  0x58   :  { %1003 = vmatpush3.bf16.msra.mxu1 %v1041_v20 }
  0x59   :  { %1004 = vmatprep.subr.bf16.mxu1 %v1182_v0 }
  0x5c   :  { %1005 = vmatpush3.bf16.msra.mxu1 %v1042_v21 }
  0x5d   :  { %1006 = vmatprep.subr.bf16.mxu1 %v1182_v0 }
  0x60   :  { %1007 = vmatpush3.bf16.msra.mxu1 %v1044_v22 }
  0x61   :  { %1008 = vmatprep.subr.bf16.mxu1 %v1182_v0 }
  0x64   :  { %1009 = vmatpush3.bf16.msra.mxu1 %v1046_v38 }
  0x65   :  { %1010 = vmatprep.subr.bf16.mxu1 %v1182_v0 }
  0x68   :  { %1011 = vmatpush3.bf16.msra.mxu1 %v1048_v39 }
  0x69   :  { %1012 = vmatprep.subr.bf16.mxu1 %v1182_v0 }
  0x6c   :  { %1013 = vmatpush3.bf16.msra.mxu1 %v1050_v40 }
  0x6d   :  { %1014 = vmatprep.subr.bf16.mxu1 %v1182_v0 }
  0x70   :  { %1015 = vmatpush3.bf16.msra.mxu1 %v1052_v41 }
  0xc6   :  { %v95_v13 = vpop.xlane.xlu0 %94 }
  0xc7   :  { %v96_v14 = vsub.f32 %v91_v1, %v95_v13  ;;  %v1184_v1 = vmov 0   ;;  %v1072_v13 = vld [vmem:[%s1539_s15] ss:$8 sps:$4 sm:$0xff]  }
  0xc9   :  { %v97_v15 = vmul.f32 1.442695, %v96_v14  ;;  %v1077_v14 = vld [vmem:[%s1539_s15 + $0x14] ss:$8 sps:$4 sm:$0xff]  }
  0xcb   :  { %1078 = vpow2.f32 %v97_v15  ;;  %v1075_v15 = vld [vmem:[%s1539_s15 + $0x10] ss:$8 sps:$4 sm:$0xff]  }
  0xd5   :  { %v1079_v16 = vpop.eup %1078 }
  0xd6   :  { %v99_v17 = vsel %vm92_vm1, %v1079_v16, 0.0 }
  0xd7   :  { %100 = vadd.xlane.f32.xlu0 %v99_v17 }
 0x126   :  { %v263_v23 = vpop.f32.mrb[0].mxu1 }
 0x127   :  { %v970_v24 = vpop.f32.mrb[1].mxu1  ;;  %v264_v33 = vadd.f32 %v866_v31, %v263_v23 }
 0x128   :  { %v266_v25 = vpop.f32.mrb[2].mxu1 }
 0x129   :  { %v971_v26 = vpop.f32.mrb[3].mxu1  ;;  %v269_v35 = vpack.c.bf16 %v264_v33, %v264_v33 }
 0x164   :  { %v101_v27 = vpop.xlane.xlu0 %100 }
 0x165   :  { %1080 = vrcp.f32 %v101_v27  ;;  %v895_v27 = vld [vmem:[%s1536_s12] ss:$0 sm:$0xff] }
 0x16f   :  { %v1081_v28 = vpop.eup %1080 }
 0x170   :  { %v103_v29 = vmul.f32 %v1081_v28, %v1079_v16 }
 0x172   :  { %v104_v32 = vpack.c.bf16 %v103_v29, %v103_v29 }
 0x174   :  { %949 = vmatmul.mubr.msk.bf16.vlgmr.msra.gmra.mrb[0].mxu0 %vm92_vm1, %v104_v32 }
 0x175   :  { %973 = vmatpush3.bf16.msra.mxu0 %v1038_v30  ;;  %976 = vmatprep.mubr.msk.bf16.mxu0 %vm1183_vm0, %v1182_v0 }
 0x176   :  { %974 = vmatprep.subr.bf16.mxu0 %v1182_v0 }
 0x179   :  { %975 = vmatpush3.bf16.msra.mxu0 %v1039_v34 }
 0x17a   :  { %980 = vmatprep.subr.bf16.mxu0 %v1182_v0 }
 0x17c   :  { %977 = vmatmul.mubr.msk.bf16.vlgmr.msra.gmra.mrb[4].mxu0 %vm293_vm2, %v269_v35 }
 0x17d   :  { %981 = vmatpush3.bf16.msra.mxu0 %v1043_v36  ;;  %984 = vmatprep.mubr.msk.bf16.mxu0 %vm1183_vm0, %v1182_v0 }
 0x17e   :  { %982 = vmatprep.subr.bf16.mxu0 %v1182_v0 }
 0x181   :  { %983 = vmatpush3.bf16.msra.mxu0 %v1045_v37 }
 0x182   :  { %988 = vmatprep.subr.bf16.mxu0 %v1182_v0 }
 0x247   :  { %v150_v42 = vpop.f32.mrb[0].mxu0 }
 0x248   :  { %v346_v44 = vpack.c.bf16 %v150_v42, %v150_v42  ;;  %v950_v45 = vpop.f32.mrb[1].mxu0 }
 0x249   :  { %v153_v46 = vpop.f32.mrb[2].mxu0 }
 0x24a   :  { %v951_v47 = vpop.f32.mrb[3].mxu0  ;;  %985 = vmatmul.mubr.msk.bf16.vlgmr.msra.gmra.mrb[8].mxu0 %vm293_vm2, %v346_v44  ;;  %v816_v46 = vld [vmem:[%s1540_s16] sm:$0x3]  ;;  %s1126_s16 = scalar_lea.vmem %s851_s20, 128 }
 0x24b   :  { %989 = vmatpush3.bf16.msra.mxu0 %v1047_v43  ;;  %996 = vmatprep.mubr.msk.bf16.mxu0 %vm1183_vm0, %v1182_v0  ;;  %v818_v43 = vlaneseq  ;;  %p1127_p2 = scmp.ne.s32.totalorder %s851_s20, %s1126_s16  ;;  %p1132_p4 = scmp.lt.s32.totalorder %s1126_s16, %s1126_s16 }
 0x24c   :  { %990 = vmatprep.subr.bf16.mxu0 %v1182_v0 }
 0x24d   :  { %v819_v44 = vshrl.u32 %v818_v43, 7  ;;  %p1133_p5 = por %p1132_p4, %p1131_p3 }
 0x24f   :  { %991 = vmatpush3.bf16.msra.mxu0 %v1049_v48  ;;  %v331_v50 = vpop.f32.mrb[4].mxu0  ;;  %v820_v45 = vsub.s32 0, %v819_v44  ;;  %v824_v47 = vsub.s32 1, %v819_v44  ;;  %p1134_p6 = pnand %p1133_p5, %p1127_p2 }
 0x250   :  { %v332_v52 = vadd.f32 %v875_v49, %v331_v50  ;;  %992 = vmatprep.subr.bf16.mxu0 %v1182_v0  ;;  %v978_v53 = vpop.f32.mrb[5].mxu0 }
 0x251   :  { %v334_v54 = vpop.f32.mrb[6].mxu0  ;;  %v821_v48 = vrot.slane %v816_v46, %v820_v45  ;;  %v825_v50 = vrot.slane %v816_v46, %v824_v47 }
 0x252   :  { %v337_v55 = vmax.f32 %v332_v52, 0.0  ;;  %v979_v56 = vpop.f32.mrb[7].mxu0 }
 0x253   :  { %993 = vmatpush3.bf16.msra.mxu0 %v1051_v51 }
 0x254   :  { %v474_v59 = vpack.c.bf16 %v337_v55, %v337_v55  ;;  %994 = vmatprep.subr.bf16.mxu0 %v1182_v0  ;;  %v1057_v0 = vld [vmem:[%s1538_s14 + $0x10] ss:$8 sps:$4 sm:$0xff]  }
 0x256   :  { %1017 = vmatmul.mubr.bf16.vlgmr.msra.gmra.mrb[4].mxu1 %v474_v59 }
 0x257   :  { %995 = vmatpush3.bf16.msra.mxu0 %v1053_v57 }
 0x258   :  { %641 = vmatprep.subr.bf16.mxu0 %v1056_v60 }
 0x25a   :  { %997 = vmatmul.mubr.msk.bf16.vlgmr.msra.gmra.mrb[12].mxu0 %vm430_vm3, %v88_v61 }
 0x25b   :  { %642 = vmatpush1.bf16.msra.mxu0 %v1054_v62  ;;  %673 = vmatprep.mubr.bf16.mxu0 %v1184_v1 }
 0x25c   :  { %643 = vmatprep.subr.bf16.mxu0 %v1059_v63 }
 0x25f   :  { %644 = vmatpush1.bf16.msra.mxu0 %v1057_v0 }
 0x260   :  { %645 = vmatprep.subr.bf16.mxu0 %v1062_v2 }
 0x263   :  { %646 = vmatpush1.bf16.msra.mxu0 %v1060_v3 }
 0x264   :  { %647 = vmatprep.subr.bf16.mxu0 %v1065_v4 }
 0x267   :  { %648 = vmatpush1.bf16.msra.mxu0 %v1063_v5 }
 0x268   :  { %705 = vmatprep.subr.bf16.mxu0 %v1068_v6 }
 0x26a   :  { %904 = vmatmul.mubr.msk.bf16.vlgmr.msra.gmra.mrb[16].mxu0 %vm430_vm3, %v88_v61 }
 0x26b   :  { %706 = vmatpush1.bf16.msra.mxu0 %v1066_v7  ;;  %737 = vmatprep.mubr.bf16.mxu0 %v1184_v1 }
 0x26c   :  { %707 = vmatprep.subr.bf16.mxu0 %v1071_v8 }
 0x26f   :  { %708 = vmatpush1.bf16.msra.mxu0 %v1069_v9 }
 0x270   :  { %773 = vmatprep.subr.bf16.mxu0 %v1074_v12 }
 0x272   :  { %909 = vmatmul.mubr.msk.bf16.vlgmr.msra.gmra.mrb[20].mxu0 %vm293_vm2, %v90_v11 }
 0x273   :  { %805 = vmatprep.mubr.bf16.mxu0 %v1184_v1  ;;  %774 = vmatpush1.bf16.msra.mxu0 %v1072_v13 }
 0x274   :  { %775 = vmatprep.subr.bf16.mxu0 %v1077_v14 }
 0x277   :  { %776 = vmatpush1.bf16.msra.mxu0 %v1075_v15 }
 0x31d   :  { %v400_v16 = vpop.f32.mrb[8].mxu0 }
 0x31e   :  { %v986_v17 = vpop.f32.mrb[9].mxu0 }
 0x31f   :  { %v403_v18 = vpop.f32.mrb[10].mxu0 }
 0x320   :  { %v987_v19 = vpop.f32.mrb[11].mxu0 }
 0x329   :  { %v573_v20 = vpop.f32.mrb[4].mxu1 }
 0x32a   :  { %v1018_v21 = vpop.f32.mrb[5].mxu1 }
 0x32b   :  { %v576_v22 = vpop.f32.mrb[6].mxu1 }
 0x32c   :  { %v1019_v23 = vpop.f32.mrb[7].mxu1 }
 0x32d   :  { %v468_v24 = vpop.f32.mrb[12].mxu0 }
 0x32e   :  { %v469_v25 = vadd.f32 %v468_v24, %v400_v16  ;;  %v998_v26 = vpop.f32.mrb[13].mxu0 }
 0x32f   :  { %v471_v28 = vpop.f32.mrb[14].mxu0 }
 0x330   :  { %v579_v29 = vadd.f32 %v573_v20, %v469_v25  ;;  %v999_v30 = vpop.f32.mrb[15].mxu0 }
 0x332   :  { %v587_v31 = vadd.f32 %v895_v27, %v579_v29 }
 0x334   :  { %v588_v32 = vpack.c.bf16 %v587_v31, %v587_v31 }
 0x336   :  { %914 = vmatmul.mubr.msk.bf16.vlgmr.msra.gmra.mrb[24].mxu0 %vm293_vm2, %v588_v32 }
 0x33d   :  { %v675_v33 = vpop.f32.mrb[16].mxu0 }
 0x33e   :  { %v677_v34 = vpop.f32.mrb[17].mxu0 }
 0x33f   :  { %v679_v35 = vpop.f32.mrb[18].mxu0 }
 0x340   :  { %v680_v36 = vpop.f32.mrb[19].mxu0 }
 0x345   :  { %v739_v37 = vpop.f32.mrb[20].mxu0 }
 0x346   :  { %v740_v38 = vadd.f32 %v739_v37, %v675_v33  ;;  %v741_v39 = vpop.f32.mrb[21].mxu0 }
 0x347   :  { %v742_v40 = vadd.f32 %v741_v39, %v677_v34  ;;  %v743_v41 = vpop.f32.mrb[22].mxu0 }
 0x348   :  { %v744_v42 = vpop.f32.mrb[23].mxu0 }
 0x409   :  { %v807_v49 = vpop.f32.mrb[24].mxu0 }
 0x40a   :  { %v814_v51 = vadd.f32 %v807_v49, %v740_v38  ;;  %v809_v52 = vpop.f32.mrb[25].mxu0 }
 0x40b   :  { %v815_v53 = vadd.f32 %v809_v52, %v742_v40  ;;  %v811_v54 = vpop.f32.mrb[26].mxu0 }
 0x40c   :  { %v828_v55 = vadd.f32 %v821_v48, %v814_v51  ;;  %v812_v56 = vpop.f32.mrb[27].mxu0 }
 0x40d   :  { %v829_v57 = vadd.f32 %v825_v50, %v815_v53 }
 0x40e   :  { %v830_v58 = vmax.f32 %v828_v55, 0.0 }
 0x40f   :  { %v832_v59 = vpack.c.bf16 %v829_v57, %v829_v57 }
 0x410   :  { %831 = vst [vmem:[#allocation8] sm:$0xff] %v830_v58 }
 0x411   :  { %833 = vst [vmem:[#allocation7] sm:$0xf] %v832_v59 }
 0x412   :  { %1137 = shalt.err (!%p1134_p6)
}
 0x413   :  { %s1138_s1 = scalar_lea.hbm %s1542_s18, 128 }
 0x414   :  { %p1139_p7 = scmp.ne.s32.totalorder %s1542_s18, %s1138_s1  ;;  %p1142_p8 = scmp.lt.u32.totalorder %s1138_s1, %s1542_s18 }
 0x416   :  { %p1144_p9 = pnand %p1142_p8, %p1139_p7 }
 0x418   :  { %1147 = shalt.err (!%p1144_p9)
}
 0x419   :  { %853 = dma.vmem_to_hbm [thread:$0]  %s851_s20, 128, %s1542_s18, [#allocation9]  }
 0x41a   :  { %s1148_s6 = scalar_lea.vmem %s841_s2, 64  ;;  %p1153_p11 = scmp.lt.s32.totalorder %s841_s2, %s841_s2 }
 0x41b   :  { %p1149_p10 = scmp.ne.s32.totalorder %s841_s2, %s1148_s6  ;;  %p1154_p12 = scmp.lt.s32.totalorder %s1148_s6, %s1148_s6 }
 0x41d   :  { %p1155_p13 = por %p1154_p12, %p1153_p11 }
 0x41f   :  { %p1156_p0 = pnand %p1155_p13, %p1149_p10 }
 0x421   :  { %1159 = shalt.err (!%p1156_p0)
}
 0x422   :  { %s1160_s5 = scalar_lea.hbm %s1541_s17, 64 }
 0x423   :  { %p1161_p1 = scmp.ne.s32.totalorder %s1541_s17, %s1160_s5  ;;  %p1164_p2 = scmp.lt.u32.totalorder %s1160_s5, %s1541_s17 }
 0x425   :  { %p1166_p3 = pnand %p1164_p2, %p1161_p1 }
 0x427   :  { %1169 = shalt.err (!%p1166_p3)
}
 0x428   :  { %843 = dma.vmem_to_hbm [thread:$0]  %s841_s2, 64, %s1541_s17, [#allocation4]  }
 0x429   :  { %1174 = dma.done.wait [#allocation4], 64  }
 0x42a   :  { %1175 = vsyncadd [#allocation4], 4294967232 }
 0x42b   :  { %1176 = dma.done.wait [#allocation9], 128  }
 0x42c   :  { %1177 = vsyncadd [#allocation9], 4294967168 }
 0x42d   :  { %860 = vsyncpa [#allocation3], 1 }
 0x42e   :  { %861 = vsyncpa [#allocation6], 1 }
 0x42f   :  { %862 = vsyncpa [#allocation4], 1 }
 0x430   :  { %863 = vsyncpa [#allocation9], 1 }

</bundles_post_ra>
